<compile_context>
chip_gen: v7x
topology: tpu7x:2x2x1
jax: 0.10.0
libtpu: 0.0.40
codegen_flags: <defaults>
</compile_context>

<pallas_src>
import functools

import jax
import jax.numpy as jnp
from jax import lax
from jax.experimental import pallas as pl
from jax.experimental.pallas import tpu as pltpu

# Whole-table-in-VMEM fast-path threshold.  Conservative so double-buffered
# table + output staging fits every generation's *default* scoped-VMEM budget
# (v5e: 16 MiB, v6e/v7x: 32 MiB) without flag overrides.
_FAST_PATH_TABLE_BYTES = 4 * 1024 * 1024
# Budget for the double-buffered (chunk, D) output staging block.
_OUT_STAGING_BYTES = 4 * 1024 * 1024


def _vmem_gather_kernel(idx_ref, embs_ref, out_ref, *, chunk, has_tail):
    """Fast path: whole (V, D) table resident in VMEM.

    idx_ref  : (S,) int32 in SMEM (scalar prefetch)
    embs_ref : (V, D) table block in VMEM (constant index_map -> loaded once)
    out_ref  : (chunk, D) output block in VMEM
    """
    base = pl.program_id(0) * chunk
    s_total = idx_ref.shape[0]
    v = embs_ref.shape[0]

    def gather_row(i):
        row = jnp.clip(idx_ref[base + i], 0, v - 1)   # cheap OOB insurance
        out_ref[i, :] = embs_ref[row, :]

    def body(i, carry):
        if has_tail:
            pl.when(base + i < s_total)(lambda: gather_row(i))
        else:
            gather_row(i)
        return carry

    lax.fori_loop(0, chunk, body, 0, unroll=min(8, chunk))


def _dma_gather_kernel(idx_ref, embs_hbm, out_ref, sems, *, chunk, window,
                       has_tail):
    """Slow path: HBM-resident table, per-row DMA gather into the pipelined
    VMEM output block (Pallas writes the whole (chunk, D) block back as one
    large DMA).

    idx_ref  : (S,) int32 in SMEM (scalar prefetch)
    embs_hbm : (V, D) table in HBM (memory_space=pl.ANY)
    out_ref  : (chunk, D) output staging block in VMEM
    sems     : (window,) DMA semaphores -- at most one outstanding copy/slot.
    """
    base = pl.program_id(0) * chunk
    s_total = idx_ref.shape[0]
    v = embs_hbm.shape[0]

    def run_if_valid(row_idx, fn):
        if has_tail:
            pl.when(base + row_idx < s_total)(fn)
        else:
            fn()

    def issue(i):
        row = jnp.clip(idx_ref[base + i], 0, v - 1)
        pltpu.make_async_copy(
            embs_hbm.at[pl.ds(row, 1)],    # (1, D) source row in HBM
            out_ref.at[pl.ds(i, 1)],       # (1, D) destination row in VMEM
            sems.at[i % window],
        ).start()

    def retire(i):
        # All row copies have identical byte size, so the wait only needs the
        # right semaphore slot + size: use a fixed descriptor (no SMEM re-read
        # of idx, no per-row address math on the drain side).
        pltpu.make_async_copy(
            embs_hbm.at[pl.ds(0, 1)],
            out_ref.at[pl.ds(0, 1)],
            sems.at[i % window],
        ).wait()

    n_prologue = min(window, chunk)
    n_main = max(chunk - window, 0)
    n_epilogue = chunk - n_main

    # Prologue: fill the window.
    def prologue_body(i, carry):
        run_if_valid(i, lambda: issue(i))
        return carry

    lax.fori_loop(0, n_prologue, prologue_body, 0, unroll=True)

    # Main: retire row i, then start row i + window on the (now free) slot.
    if n_main > 0:
        def main_body(i, carry):
            run_if_valid(i, lambda: retire(i))
            run_if_valid(i + window, lambda: issue(i + window))
            return carry

        lax.fori_loop(0, n_main, main_body, 0, unroll=min(8, n_main))

    # Epilogue: drain the last min(window, chunk) rows.
    def epilogue_body(j, carry):
        i = n_main + j
        run_if_valid(i, lambda: retire(i))
        return carry

    lax.fori_loop(0, n_epilogue, epilogue_body, 0, unroll=True)


def glove_forward(embs: jax.Array, idx_list: jax.Array, *, chunk: int = 512,
                  window: int = 16,
                  vmem_table_bytes_max: int = _FAST_PATH_TABLE_BYTES) -> jax.Array:
    """Pallas equivalent of GloveEmbeddings.forward: out[i] = embs[idx[i]]."""
    V, D = embs.shape
    (S,) = idx_list.shape
    if S == 0:
        return jnp.zeros((0, D), embs.dtype)
    idx_list = idx_list.astype(jnp.int32)
    itemsize = jnp.dtype(embs.dtype).itemsize

    # Cap the chunk so the double-buffered (chunk, D) output staging block
    # stays well inside the default scoped-VMEM budget on all generations
    # (v7x: 64 MiB physical / 32 MiB scoped default).
    max_rows = max(8, (_OUT_STAGING_BYTES // (2 * D * itemsize)) // 8 * 8)
    chunk = max(1, min(chunk, max_rows))
    if S <= chunk:
        chunk = S                            # single block == full array dim
    else:
        chunk = max(8, (chunk // 8) * 8)     # keep the (8, 128) sublane rule
    num_chunks = pl.cdiv(S, chunk)
    has_tail = (S % chunk) != 0
    window = max(1, min(window, chunk))

    out_shape = jax.ShapeDtypeStruct((S, D), embs.dtype)
    out_spec = pl.BlockSpec((chunk, D), lambda c, idx: (c, 0))
    compiler_params = pltpu.CompilerParams(
        # Chunks write disjoint output blocks and fully drain their DMAs before
        # returning; "parallel" shards them across the 2 TensorCores on v7x
        # (no-op on v5e/v6e).
        dimension_semantics=("parallel",),
    )
    # TODO(synk): for very long sequences (S in the hundreds of thousands),
    # feed indices per-chunk via an SMEM BlockSpec instead of one big scalar
    # prefetch (1D SMEM pads to next_pow2(4S) bytes).

    table_bytes = V * D * itemsize
    if table_bytes <= vmem_table_bytes_max:
        # Fast path: whole table in VMEM, gather with vector loads/stores.
        grid_spec = pltpu.PrefetchScalarGridSpec(
            num_scalar_prefetch=1,
            grid=(num_chunks,),
            in_specs=[pl.BlockSpec((V, D), lambda c, idx: (0, 0))],
            out_specs=out_spec,
        )
        kernel = functools.partial(_vmem_gather_kernel, chunk=chunk,
                                   has_tail=has_tail)
    else:
        # Slow path: HBM table, sliding-window per-row DMA gather into the
        # pipelined VMEM output block.
        grid_spec = pltpu.PrefetchScalarGridSpec(
            num_scalar_prefetch=1,
            grid=(num_chunks,),
            in_specs=[pl.BlockSpec(memory_space=pl.ANY)],
            out_specs=out_spec,
            scratch_shapes=[pltpu.SemaphoreType.DMA((window,))],
        )
        kernel = functools.partial(_dma_gather_kernel, chunk=chunk,
                                   window=window, has_tail=has_tail)

    return pl.pallas_call(
        kernel,
        grid_spec=grid_spec,
        out_shape=out_shape,
        compiler_params=compiler_params,
    )(idx_list, embs)


class GloveEmbeddingsPallas:
    """Minimal JAX/Pallas port of the PyTorch GloveEmbeddings module."""

    def __init__(self, words, word2idx, embs):
        self.words = words
        self.word2idx = word2idx
        # Keep the table UNPADDED: HBM row DMAs need no lane alignment, and
        # padding (D=300 -> 384) would inflate HBM traffic ~28% for nothing.
        # TODO(synk): optionally store the table in bf16 to halve HBM read
        # bytes at real-GloVe scale (cast rows to f32 after the gather).
        self.embs = jnp.asarray(embs, dtype=jnp.float32)
        self.dim = self.embs.shape[1]

    def to_id(self, word):
        # O(1) dict lookup, same semantics as the torch list-scan version.
        return self.word2idx.get(word, self.word2idx["<unk>"])

    def to_token(self, idx):
        return self.words[idx]

    def forward(self, idx_list):
        return glove_forward(self.embs, jnp.asarray(idx_list, dtype=jnp.int32))

    def make(self, text):
        curr_words = text.strip().lower().split()
        token_ids = jnp.array([self.to_id(w) for w in curr_words], dtype=jnp.int32)
        return self.forward(token_ids)

    def make_one(self, text):
        curr_words = text.strip().lower().split()
        token_id = jnp.array([self.to_id(curr_words[0])], dtype=jnp.int32)
        return self.forward(token_id).reshape(-1)


if __name__ == "__main__":
    key = jax.random.PRNGKey(0)
    k_emb, k_idx, k_emb2, k_idx2 = jax.random.split(key, 4)

    # --- Fast path (table fits VMEM): demo-sized module ----------------------
    V, D, S = 32, 128, 8
    embs = jax.random.normal(k_emb, (V, D), dtype=jnp.float32)
    words = [f"w{i}" for i in range(V - 1)] + ["<unk>"]
    word2idx = {w: i for i, w in enumerate(words)}
    module = GloveEmbeddingsPallas(words, word2idx, embs)

    idx_list = jax.random.randint(k_idx, (S,), 0, V, dtype=jnp.int32)
    out = jax.block_until_ready(module.forward(idx_list))
    ref = jnp.take(embs, idx_list, axis=0)
    assert out.shape == (S, D)
    assert jnp.allclose(out, ref), "fast-path gather mismatch"

    # Fast path with multiple chunks + ragged tail (S=20, chunk=16 -> 16 + 4).
    S_t = 20
    idx_t = jax.random.randint(k_idx2, (S_t,), 0, V, dtype=jnp.int32)
    out_t = jax.block_until_ready(glove_forward(embs, idx_t, chunk=16))
    assert jnp.allclose(out_t, jnp.take(embs, idx_t, axis=0)), \
        "fast-path tail mismatch"

    # --- Slow path (HBM table, per-row DMA gather) ----------------------------
    # Force it with vmem_table_bytes_max=0; unaligned D (96) and a ragged
    # multi-chunk sequence (S=300, chunk=128 -> chunks of 128 / 128 / 44).
    V2, D2, S2 = 64, 96, 300
    embs2 = jax.random.normal(k_emb2, (V2, D2), dtype=jnp.float32)
    idx2 = jax.random.randint(k_idx2, (S2,), 0, V2, dtype=jnp.int32)
    out2 = jax.block_until_ready(
        glove_forward(embs2, idx2, chunk=128, window=16,
                      vmem_table_bytes_max=0))
    assert out2.shape == (S2, D2)
    assert jnp.allclose(out2, jnp.take(embs2, idx2, axis=0)), \
        "slow-path DMA gather mismatch"

    # Exercise the text helpers once (same code path as the torch module).
    sent = module.make("w0 w3 not_in_vocab")
    one = module.make_one("w5")
    jax.block_until_ready((sent, one))
    assert sent.shape == (3, D) and one.shape == (D,)

    print("KERNEL_OK")
</pallas_src>

<mosaic_0001>
module attributes {stable_mosaic.version = 11 : i64} {
  func.func @_vmem_gather_kernel(%arg0: i32, %arg1: memref<8xi32, #tpu.memory_space<smem>>, %arg2: memref<32x128xf32, #tpu.memory_space<vmem>>, %arg3: memref<8x128xf32, #tpu.memory_space<vmem>>) attributes {dimension_semantics = [#tpu.dimension_semantics<parallel>], iteration_bounds = array<i64: 1>, scalar_prefetch = 1 : i64, scratch_operands = 0 : i64, tpu.core_type = #tpu.core_type<tc>, window_params = [{pipeline_mode = #tpu.pipeline_mode<synchronous>, transform_indices = @transform_0, window_bounds = array<i64: 32, 128>}, {transform_indices = @transform_1, window_bounds = array<i64: 8, 128>}]} {
    %c8_i32 = arith.constant 8 : i32
    %0 = arith.muli %arg0, %c8_i32 : i32
    %c0_i32 = arith.constant 0 : i32
    %1 = arith.addi %0, %c0_i32 : i32
    %2 = arith.index_cast %1 : i32 to index
    %3 = memref.load %arg1[%2] : memref<8xi32, #tpu.memory_space<smem>>
    %c0_i32_0 = arith.constant 0 : i32
    %c31_i32 = arith.constant 31 : i32
    %4 = arith.maxsi %c0_i32_0, %3 : i32
    %5 = arith.minsi %c31_i32, %4 : i32
    %6 = arith.index_cast %5 : i32 to index
    %c0 = arith.constant 0 : index
    %7 = vector.load %arg2[%6, %c0] : memref<32x128xf32, #tpu.memory_space<vmem>>, vector<1x128xf32>
    %8 = vector.shape_cast %7 : vector<1x128xf32> to vector<128xf32>
    %9 = arith.index_cast %c0_i32 : i32 to index
    %c0_1 = arith.constant 0 : index
    %10 = vector.load %arg3[%9, %c0_1] : memref<8x128xf32, #tpu.memory_space<vmem>>, vector<1x128xf32>
    %11 = vector.shape_cast %10 : vector<1x128xf32> to vector<128xf32>
    %12 = vector.shape_cast %8 : vector<128xf32> to vector<1x128xf32>
    tpu.vector_store %arg3[%9, %c0_1], %12 {strides = array<i32>} : memref<8x128xf32, #tpu.memory_space<vmem>>, vector<1x128xf32>,
    %c1_i32 = arith.constant 1 : i32
    %13 = arith.addi %0, %c1_i32 : i32
    %14 = arith.index_cast %13 : i32 to index
    %15 = memref.load %arg1[%14] : memref<8xi32, #tpu.memory_space<smem>>
    %c0_i32_2 = arith.constant 0 : i32
    %c31_i32_3 = arith.constant 31 : i32
    %16 = arith.maxsi %c0_i32_2, %15 : i32
    %17 = arith.minsi %c31_i32_3, %16 : i32
    %18 = arith.index_cast %17 : i32 to index
    %c0_4 = arith.constant 0 : index
    %19 = vector.load %arg2[%18, %c0_4] : memref<32x128xf32, #tpu.memory_space<vmem>>, vector<1x128xf32>
    %20 = vector.shape_cast %19 : vector<1x128xf32> to vector<128xf32>
    %21 = arith.index_cast %c1_i32 : i32 to index
    %c0_5 = arith.constant 0 : index
    %22 = vector.load %arg3[%21, %c0_5] : memref<8x128xf32, #tpu.memory_space<vmem>>, vector<1x128xf32>
    %23 = vector.shape_cast %22 : vector<1x128xf32> to vector<128xf32>
    %24 = vector.shape_cast %20 : vector<128xf32> to vector<1x128xf32>
    tpu.vector_store %arg3[%21, %c0_5], %24 {strides = array<i32>} : memref<8x128xf32, #tpu.memory_space<vmem>>, vector<1x128xf32>,
    %c2_i32 = arith.constant 2 : i32
    %25 = arith.addi %0, %c2_i32 : i32
    %26 = arith.index_cast %25 : i32 to index
    %27 = memref.load %arg1[%26] : memref<8xi32, #tpu.memory_space<smem>>
    %c0_i32_6 = arith.constant 0 : i32
    %c31_i32_7 = arith.constant 31 : i32
    %28 = arith.maxsi %c0_i32_6, %27 : i32
    %29 = arith.minsi %c31_i32_7, %28 : i32
    %30 = arith.index_cast %29 : i32 to index
    %c0_8 = arith.constant 0 : index
    %31 = vector.load %arg2[%30, %c0_8] : memref<32x128xf32, #tpu.memory_space<vmem>>, vector<1x128xf32>
    %32 = vector.shape_cast %31 : vector<1x128xf32> to vector<128xf32>
    %33 = arith.index_cast %c2_i32 : i32 to index
    %c0_9 = arith.constant 0 : index
    %34 = vector.load %arg3[%33, %c0_9] : memref<8x128xf32, #tpu.memory_space<vmem>>, vector<1x128xf32>
    %35 = vector.shape_cast %34 : vector<1x128xf32> to vector<128xf32>
    %36 = vector.shape_cast %32 : vector<128xf32> to vector<1x128xf32>
    tpu.vector_store %arg3[%33, %c0_9], %36 {strides = array<i32>} : memref<8x128xf32, #tpu.memory_space<vmem>>, vector<1x128xf32>,
    %c3_i32 = arith.constant 3 : i32
    %37 = arith.addi %0, %c3_i32 : i32
    %38 = arith.index_cast %37 : i32 to index
    %39 = memref.load %arg1[%38] : memref<8xi32, #tpu.memory_space<smem>>
    %c0_i32_10 = arith.constant 0 : i32
    %c31_i32_11 = arith.constant 31 : i32
    %40 = arith.maxsi %c0_i32_10, %39 : i32
    %41 = arith.minsi %c31_i32_11, %40 : i32
    %42 = arith.index_cast %41 : i32 to index
    %c0_12 = arith.constant 0 : index
    %43 = vector.load %arg2[%42, %c0_12] : memref<32x128xf32, #tpu.memory_space<vmem>>, vector<1x128xf32>
    %44 = vector.shape_cast %43 : vector<1x128xf32> to vector<128xf32>
    %45 = arith.index_cast %c3_i32 : i32 to index
    %c0_13 = arith.constant 0 : index
    %46 = vector.load %arg3[%45, %c0_13] : memref<8x128xf32, #tpu.memory_space<vmem>>, vector<1x128xf32>
    %47 = vector.shape_cast %46 : vector<1x128xf32> to vector<128xf32>
    %48 = vector.shape_cast %44 : vector<128xf32> to vector<1x128xf32>
    tpu.vector_store %arg3[%45, %c0_13], %48 {strides = array<i32>} : memref<8x128xf32, #tpu.memory_space<vmem>>, vector<1x128xf32>,
    %c4_i32 = arith.constant 4 : i32
    %49 = arith.addi %0, %c4_i32 : i32
    %50 = arith.index_cast %49 : i32 to index
    %51 = memref.load %arg1[%50] : memref<8xi32, #tpu.memory_space<smem>>
    %c0_i32_14 = arith.constant 0 : i32
    %c31_i32_15 = arith.constant 31 : i32
    %52 = arith.maxsi %c0_i32_14, %51 : i32
    %53 = arith.minsi %c31_i32_15, %52 : i32
    %54 = arith.index_cast %53 : i32 to index
    %c0_16 = arith.constant 0 : index
    %55 = vector.load %arg2[%54, %c0_16] : memref<32x128xf32, #tpu.memory_space<vmem>>, vector<1x128xf32>
    %56 = vector.shape_cast %55 : vector<1x128xf32> to vector<128xf32>
    %57 = arith.index_cast %c4_i32 : i32 to index
    %c0_17 = arith.constant 0 : index
    %58 = vector.load %arg3[%57, %c0_17] : memref<8x128xf32, #tpu.memory_space<vmem>>, vector<1x128xf32>
    %59 = vector.shape_cast %58 : vector<1x128xf32> to vector<128xf32>
    %60 = vector.shape_cast %56 : vector<128xf32> to vector<1x128xf32>
    tpu.vector_store %arg3[%57, %c0_17], %60 {strides = array<i32>} : memref<8x128xf32, #tpu.memory_space<vmem>>, vector<1x128xf32>,
    %c5_i32 = arith.constant 5 : i32
    %61 = arith.addi %0, %c5_i32 : i32
    %62 = arith.index_cast %61 : i32 to index
    %63 = memref.load %arg1[%62] : memref<8xi32, #tpu.memory_space<smem>>
    %c0_i32_18 = arith.constant 0 : i32
    %c31_i32_19 = arith.constant 31 : i32
    %64 = arith.maxsi %c0_i32_18, %63 : i32
    %65 = arith.minsi %c31_i32_19, %64 : i32
    %66 = arith.index_cast %65 : i32 to index
    %c0_20 = arith.constant 0 : index
    %67 = vector.load %arg2[%66, %c0_20] : memref<32x128xf32, #tpu.memory_space<vmem>>, vector<1x128xf32>
    %68 = vector.shape_cast %67 : vector<1x128xf32> to vector<128xf32>
    %69 = arith.index_cast %c5_i32 : i32 to index
    %c0_21 = arith.constant 0 : index
    %70 = vector.load %arg3[%69, %c0_21] : memref<8x128xf32, #tpu.memory_space<vmem>>, vector<1x128xf32>
    %71 = vector.shape_cast %70 : vector<1x128xf32> to vector<128xf32>
    %72 = vector.shape_cast %68 : vector<128xf32> to vector<1x128xf32>
    tpu.vector_store %arg3[%69, %c0_21], %72 {strides = array<i32>} : memref<8x128xf32, #tpu.memory_space<vmem>>, vector<1x128xf32>,
    %c6_i32 = arith.constant 6 : i32
    %73 = arith.addi %0, %c6_i32 : i32
    %74 = arith.index_cast %73 : i32 to index
    %75 = memref.load %arg1[%74] : memref<8xi32, #tpu.memory_space<smem>>
    %c0_i32_22 = arith.constant 0 : i32
    %c31_i32_23 = arith.constant 31 : i32
    %76 = arith.maxsi %c0_i32_22, %75 : i32
    %77 = arith.minsi %c31_i32_23, %76 : i32
    %78 = arith.index_cast %77 : i32 to index
    %c0_24 = arith.constant 0 : index
    %79 = vector.load %arg2[%78, %c0_24] : memref<32x128xf32, #tpu.memory_space<vmem>>, vector<1x128xf32>
    %80 = vector.shape_cast %79 : vector<1x128xf32> to vector<128xf32>
    %81 = arith.index_cast %c6_i32 : i32 to index
    %c0_25 = arith.constant 0 : index
    %82 = vector.load %arg3[%81, %c0_25] : memref<8x128xf32, #tpu.memory_space<vmem>>, vector<1x128xf32>
    %83 = vector.shape_cast %82 : vector<1x128xf32> to vector<128xf32>
    %84 = vector.shape_cast %80 : vector<128xf32> to vector<1x128xf32>
    tpu.vector_store %arg3[%81, %c0_25], %84 {strides = array<i32>} : memref<8x128xf32, #tpu.memory_space<vmem>>, vector<1x128xf32>,
    %c7_i32 = arith.constant 7 : i32
    %85 = arith.addi %0, %c7_i32 : i32
    %86 = arith.index_cast %85 : i32 to index
    %87 = memref.load %arg1[%86] : memref<8xi32, #tpu.memory_space<smem>>
    %c0_i32_26 = arith.constant 0 : i32
    %c31_i32_27 = arith.constant 31 : i32
    %88 = arith.maxsi %c0_i32_26, %87 : i32
    %89 = arith.minsi %c31_i32_27, %88 : i32
    %90 = arith.index_cast %89 : i32 to index
    %c0_28 = arith.constant 0 : index
    %91 = vector.load %arg2[%90, %c0_28] : memref<32x128xf32, #tpu.memory_space<vmem>>, vector<1x128xf32>
    %92 = vector.shape_cast %91 : vector<1x128xf32> to vector<128xf32>
    %93 = arith.index_cast %c7_i32 : i32 to index
    %c0_29 = arith.constant 0 : index
    %94 = vector.load %arg3[%93, %c0_29] : memref<8x128xf32, #tpu.memory_space<vmem>>, vector<1x128xf32>
    %95 = vector.shape_cast %94 : vector<1x128xf32> to vector<128xf32>
    %96 = vector.shape_cast %92 : vector<128xf32> to vector<1x128xf32>
    tpu.vector_store %arg3[%93, %c0_29], %96 {strides = array<i32>} : memref<8x128xf32, #tpu.memory_space<vmem>>, vector<1x128xf32>,
    %c8_i32_30 = arith.constant 8 : i32
    return
  }
  func.func @transform_0(%arg0: i32, %arg1: memref<8xi32, #tpu.memory_space<smem>>) -> (i32, i32) {
    %c0_i32 = arith.constant 0 : i32
    %c0_i32_0 = arith.constant 0 : i32
    %c0_i32_1 = arith.constant 0 : i32
    return %c0_i32, %c0_i32_0 : i32, i32
  }
  func.func @transform_1(%arg0: i32, %arg1: memref<8xi32, #tpu.memory_space<smem>>) -> (i32, i32) {
    %c0_i32 = arith.constant 0 : i32
    %c0_i32_0 = arith.constant 0 : i32
    return %arg0, %c0_i32 : i32, i32
  }
}

</mosaic_0001>

<bundles_post_ra>
// kernel: tpu_custom_call.1
= control target key start
LH: loop header
LB: loop body
LE: loop exit
PB: predicated region body
PF: predicated region fallthrough
CT: control target
= control target key end

     0   :  { %s332_s0 = inlined_call_operand.hbm [shape: s32[8], index: 0, kind: input, shape index: {}]   ;;  %s333_s1 = inlined_call_operand.hbm [shape: f32[32,128], index: 1, kind: input, shape index: {}]   ;;  %s334_s2 = inlined_call_operand.hbm [shape: f32[8,128], index: 2, kind: output, shape index: {}]  }
   0x1   :  { %s191_s11 = scalar_lea.hbm %s332_s0, 16 }
   0x2   :  { %p192_p0 = scmp.ne.s32.totalorder %s332_s0, %s191_s11  ;;  %p195_p1 = scmp.lt.u32.totalorder %s191_s11, %s332_s0 }
   0x4   :  { %p197_p2 = pnand %p195_p1, %p192_p0 }
   0x6   :  { %200 = shalt.err (!%p197_p2)  }
   0x7   :  { %s251_s16 = smov [#allocation3]  }
   0x8   :  { %8 = dma.hbm_to_smem %s332_s0, 16, %s251_s16, [#allocation2] }
   0x9   :  { %245 = dma.done.wait [#allocation2], 16 }
   0xa   :  { %246 = vsyncadd [#allocation2], 4294967280 }
   0xb   :  { %10 = sfence }
   0xc   :  { %11 = vsyncpa [#allocation5], 0 }
   0xd   :  { %12 = vsyncpa [#allocation6], 0  ;;  %s252_s19 = smov [#allocation4]   ;;  %s201_s23 = scalar_lea.hbm %s333_s1, 512 }
   0xe   :  { %s18_s20 = sshll.u32 %s252_s19, 4  ;;  %p202_p3 = scmp.ne.s32.totalorder %s333_s1, %s201_s23  ;;  %s19_s20 = int_to_ptr.vmem [resolvable:$true] %s18_s20 }
   0xf   :  { %p205_p4 = scmp.lt.u32.totalorder %s201_s23, %s333_s1 }
  0x11   :  { %p207_p5 = pnand %p205_p4, %p202_p3 }
  0x13   :  { %210 = shalt.err (!%p207_p5)
}
  0x14   :  { %s211_s0 = scalar_lea.vmem %s19_s20, 512  ;;  %p216_p7 = scmp.lt.s32.totalorder %s19_s20, %s19_s20 }
  0x15   :  { %p212_p6 = scmp.ne.s32.totalorder %s19_s20, %s211_s0  ;;  %p217_p8 = scmp.lt.s32.totalorder %s211_s0, %s211_s0 }
  0x17   :  { %p218_p9 = por %p217_p8, %p216_p7 }
  0x19   :  { %p219_p10 = pnand %p218_p9, %p212_p6 }
  0x1b   :  { %222 = shalt.err (!%p219_p10)
}
  0x1c   :  { %s253_s28 = smov 128   ;;  %s254_s29 = smov 8  }
  0x1d   :  { %24 = dma.hbm_to_vmem [thread:$0]  %s333_s1, 512, %s19_s20, [#allocation5], %s253_s28, %s253_s28, %s254_s29  }
  0x1e   :  { %247 = dma.done.wait [#allocation5], 512  }
  0x1f   :  { %248 = vsyncadd [#allocation5], 4294966784  ;;  %s29_s4 = sld [smem:[#allocation3]]  ;;  %s128_s5 = sld [smem:[#allocation3 + $0x1]] }
  0x20   :  { %s134_s6 = sld [smem:[#allocation3 + $0x2]]  ;;  %s295_s7 = sld [smem:[#allocation3 + $0x3]] }
  0x21   :  { %s297_s8 = sld [smem:[#allocation3 + $0x4]]  ;;  %s299_s9 = sld [smem:[#allocation3 + $0x5]] }
  0x22   :  { %s301_s10 = sld [smem:[#allocation3 + $0x6]]  ;;  %s303_s11 = sld [smem:[#allocation3 + $0x7]] }
  0x23   :  { %s255_s19 = smov [#allocation7]  }
  0x24   :  { %s106_s20 = sshll.u32 %s255_s19, 4  ;;  %s107_s20 = int_to_ptr.vmem [resolvable:$true] %s106_s20 }
  0x25   :  { %p30_p11 = scmp.gt.s32.totalorder %s29_s4, 0  ;;  %p123_p12 = scmp.lt.s32.totalorder %s29_s4, 31 }
  0x26   :  { %p39_p13 = scmp.gt.s32.totalorder %s128_s5, 0  ;;  %p129_p0 = scmp.lt.s32.totalorder %s128_s5, 31 }
  0x27   :  { %s336_s4 = smov (!%p30_p11, %s29_s4), 0  ;;  %p48_p1 = scmp.gt.s32.totalorder %s134_s6, 0 }
  0x28   :  { %s338_s5 = smov (!%p39_p13, %s128_s5), 0  ;;  %s340_s4 = smov (!%p123_p12, %s336_s4), 31 }
  0x29   :  { %s342_s5 = smov (!%p129_p0, %s338_s5), 31  ;;  %s34_s1 = scalar_lea.vmem [#allocation4], %s340_s4 }
  0x2a   :  { %v35_v0 = vld [vmem:[%s34_s1] sm:$0x1]  ;;  %p135_p2 = scmp.lt.s32.totalorder %s134_s6, 31  ;;  %s43_s12 = scalar_lea.vmem [#allocation4], %s342_s5 }
  0x2b   :  { %36 = vst [vmem:[#allocation7] sm:$0x1] %v35_v0  ;;  %v44_v1 = vld [vmem:[%s43_s12] sm:$0x1]  ;;  %s344_s6 = smov (!%p48_p1, %s134_s6), 0  ;;  %p57_p3 = scmp.gt.s32.totalorder %s295_s7, 0 }
  0x2c   :  { %45 = vst [vmem:[#allocation7 + $0x1] sm:$0x1] %v44_v1  ;;  %p141_p4 = scmp.lt.s32.totalorder %s295_s7, 31  ;;  %s346_s6 = smov (!%p135_p2, %s344_s6), 31 }
  0x2d   :  { %s348_s7 = smov (!%p57_p3, %s295_s7), 0  ;;  %p66_p5 = scmp.gt.s32.totalorder %s297_s8, 0 }
  0x2e   :  { %s52_s13 = scalar_lea.vmem [#allocation4], %s346_s6  ;;  %s350_s7 = smov (!%p141_p4, %s348_s7), 31 }
  0x2f   :  { %v53_v2 = vld [vmem:[%s52_s13] sm:$0x1]  ;;  %s67_s14 = scalar_select %p66_p5, %s297_s8, 0 }
  0x30   :  { %54 = vst [vmem:[#allocation7 + $0x2] sm:$0x1] %v53_v2  ;;  %p147_p6 = scmp.lt.s32.totalorder %s297_s8, 31  ;;  %s61_s15 = scalar_lea.vmem [#allocation4], %s350_s7 }
  0x31   :  { %v62_v3 = vld [vmem:[%s61_s15] sm:$0x1]  ;;  %p75_p7 = scmp.gt.s32.totalorder %s299_s9, 0  ;;  %p153_p8 = scmp.lt.s32.totalorder %s299_s9, 31 }
  0x32   :  { %63 = vst [vmem:[#allocation7 + $0x3] sm:$0x1] %v62_v3  ;;  %s352_s14 = smov (!%p147_p6, %s67_s14), 31  ;;  %p84_p9 = scmp.gt.s32.totalorder %s301_s10, 0 }
  0x33   :  { %s354_s9 = smov (!%p75_p7, %s299_s9), 0  ;;  %s70_s16 = scalar_lea.vmem [#allocation4], %s352_s14 }
  0x34   :  { %v71_v4 = vld [vmem:[%s70_s16] sm:$0x1]  ;;  %s356_s9 = smov (!%p153_p8, %s354_s9), 31  ;;  %p159_p10 = scmp.lt.s32.totalorder %s301_s10, 31 }
  0x35   :  { %72 = vst [vmem:[#allocation7 + $0x4] sm:$0x1] %v71_v4  ;;  %s85_s17 = scalar_select %p84_p9, %s301_s10, 0 }
  0x36   :  { %s79_s18 = scalar_lea.vmem [#allocation4], %s356_s9  ;;  %p93_p11 = scmp.gt.s32.totalorder %s303_s11, 0 }
  0x37   :  { %v80_v5 = vld [vmem:[%s79_s18] sm:$0x1]  ;;  %p165_p12 = scmp.lt.s32.totalorder %s303_s11, 31  ;;  %s358_s17 = smov (!%p159_p10, %s85_s17), 31 }
  0x38   :  { %81 = vst [vmem:[#allocation7 + $0x5] sm:$0x1] %v80_v5  ;;  %s360_s11 = smov (!%p93_p11, %s303_s11), 0  ;;  %s88_s21 = scalar_lea.vmem [#allocation4], %s358_s17 }
  0x39   :  { %v89_v6 = vld [vmem:[%s88_s21] sm:$0x1]  ;;  %s362_s11 = smov (!%p165_p12, %s360_s11), 31  ;;  %s223_s23 = scalar_lea.vmem %s107_s20, 128 }
  0x3a   :  { %90 = vst [vmem:[#allocation7 + $0x6] sm:$0x1] %v89_v6  ;;  %s97_s22 = scalar_lea.vmem [#allocation4], %s362_s11  ;;  %p224_p13 = scmp.ne.s32.totalorder %s107_s20, %s223_s23 }
  0x3b   :  { %v98_v7 = vld [vmem:[%s97_s22] sm:$0x1]  ;;  %p228_p0 = scmp.lt.s32.totalorder %s107_s20, %s107_s20  ;;  %p229_p1 = scmp.lt.s32.totalorder %s223_s23, %s223_s23 }
  0x3c   :  { %99 = vst [vmem:[#allocation7 + $0x7] sm:$0x1] %v98_v7 }
  0x3d   :  { %p230_p2 = por %p229_p1, %p228_p0 }
  0x3f   :  { %p231_p3 = pnand %p230_p2, %p224_p13 }
  0x41   :  { %234 = shalt.err (!%p231_p3)
}
  0x42   :  { %s235_s26 = scalar_lea.hbm %s334_s2, 128 }
  0x43   :  { %p236_p4 = scmp.ne.s32.totalorder %s334_s2, %s235_s26  ;;  %p239_p5 = scmp.lt.u32.totalorder %s235_s26, %s334_s2 }
  0x45   :  { %p241_p6 = pnand %p239_p5, %p236_p4 }
  0x47   :  { %244 = shalt.err (!%p241_p6)
}
  0x48   :  { %109 = dma.vmem_to_hbm [thread:$0]  %s107_s20, 128, %s334_s2, [#allocation6]  }
  0x49   :  { %249 = dma.done.wait [#allocation6], 128  }
  0x4a   :  { %250 = vsyncadd [#allocation6], 4294967168 }
  0x4b   :  { %113 = vsyncpa [#allocation5], 1 }
  0x4c   :  { %114 = vsyncpa [#allocation6], 1 }

</bundles_post_ra>
